<compile_context>
chip_gen: v7x
topology: tpu7x:2x2x1
jax: 0.10.0
libtpu: 0.0.40
codegen_flags: <defaults>
</compile_context>

<pallas_src>
import math
import functools

import jax
import jax.numpy as jnp
from jax.experimental import pallas as pl
from jax.experimental.pallas import tpu as pltpu


# ---------------------------------------------------------------------------
# Fused kernel: all heads + output projection for one batch element.
# grid = (B,)
# ---------------------------------------------------------------------------
def _mha_fused_kernel(x_ref, wqkv_ref, bqkv_ref, wo_ref, bo_ref,
                      out_ref, *probs_refs,
                      num_heads, head_dim, return_probs):
    H, dh = num_heads, head_dim
    A = H * dh
    scale = 1.0 / math.sqrt(dh)

    x_bf = x_ref[...].astype(jnp.bfloat16)               # (T, D)
    w_qkv = wqkv_ref[...].astype(jnp.bfloat16)           # (D, 3A)
    b_qkv = bqkv_ref[...]                                 # (1, 3A) f32

    # Single wide QKV matmul: (T, D) @ (D, 3A) -> (T, 3A), f32 accumulation.
    qkv = jnp.dot(x_bf, w_qkv, preferred_element_type=jnp.float32) + b_qkv

    # Hoisted scale-fold and bf16 casts (one wide op each, not per head).
    q_bf = (qkv[:, 0:A] * scale).astype(jnp.bfloat16)     # (T, A)
    k_bf = qkv[:, A:2 * A].astype(jnp.bfloat16)           # (T, A)
    v_bf = qkv[:, 2 * A:3 * A].astype(jnp.bfloat16)       # (T, A)

    head_outs = []
    probs_list = []
    for h in range(H):                                    # static loop over heads
        sl = slice(h * dh, (h + 1) * dh)
        qh, kh, vh = q_bf[:, sl], k_bf[:, sl], v_bf[:, sl]

        scores = jnp.dot(qh, kh.T, preferred_element_type=jnp.float32)   # (T, T)

        # softmax over last dim (f32)
        m = jnp.max(scores, axis=-1, keepdims=True)
        e = jnp.exp(scores - m)
        denom = jnp.sum(e, axis=-1, keepdims=True)
        probs = e * pl.reciprocal(denom, approx=True)      # EUP reciprocal

        if return_probs:
            probs_list.append(probs)

        head_outs.append(
            jnp.dot(probs.astype(jnp.bfloat16), vh,
                    preferred_element_type=jnp.float32))   # (T, dh) f32

    if return_probs:
        # Single stacked store (one lane-dense (H, T, T) write).
        probs_refs[0][...] = jnp.stack(probs_list, axis=0).astype(probs_refs[0].dtype)

    # Head concat (torch.cat(dim=-1) ordering) stays in VMEM.
    concat = jnp.concatenate(head_outs, axis=-1)           # (T, A) f32

    # Fused output projection: (T, A) @ (A, D) + b -> (T, D)
    wo = wo_ref[...].astype(jnp.bfloat16)
    bo = bo_ref[...]
    out = jnp.dot(concat.astype(jnp.bfloat16), wo,
                  preferred_element_type=jnp.float32) + bo
    out_ref[...] = out.astype(out_ref.dtype)


# ---------------------------------------------------------------------------
# Wrapper
# ---------------------------------------------------------------------------
def multi_head_attention(x, params, output_attentions=False):
    """x: [B, T, D] float32.  Returns (attention_output, attention_probs|None)."""
    B, T, D = x.shape
    wq, wk, wv = params["wq"], params["wk"], params["wv"]       # [H, D, dh]
    bq, bk, bv = params["bq"], params["bk"], params["bv"]       # [H, 1, dh]
    wo, bo = params["wo"], params["bo"]                         # [A, D], [1, D]
    H, _, dh = wq.shape
    A = H * dh

    # One-time weight packing: per-head [H, D, dh] -> head-concat [D, H*dh]
    # (same column ordering as torch.cat([q_h for h], dim=-1)).
    def pack_w(w):
        return jnp.transpose(w, (1, 0, 2)).reshape(D, A)

    def pack_b(b):
        return jnp.transpose(b, (1, 0, 2)).reshape(1, A)

    w_qkv = jnp.concatenate([pack_w(wq), pack_w(wk), pack_w(wv)], axis=1)  # [D, 3A]
    b_qkv = jnp.concatenate([pack_b(bq), pack_b(bk), pack_b(bv)], axis=1)  # [1, 3A]

    kernel = functools.partial(
        _mha_fused_kernel, num_heads=H, head_dim=dh, return_probs=output_attentions)

    # Leading batch dim squeezed (None) so the kernel sees clean 2-D/3-D refs.
    if output_attentions:
        out_shape = (jax.ShapeDtypeStruct((B, T, D), x.dtype),
                     jax.ShapeDtypeStruct((B, H, T, T), jnp.float32))
        out_specs = (pl.BlockSpec((None, T, D), lambda b: (b, 0, 0)),
                     pl.BlockSpec((None, H, T, T), lambda b: (b, 0, 0, 0)))
    else:
        out_shape = jax.ShapeDtypeStruct((B, T, D), x.dtype)
        out_specs = pl.BlockSpec((None, T, D), lambda b: (b, 0, 0))

    results = pl.pallas_call(
        kernel,
        out_shape=out_shape,
        grid_spec=pltpu.PrefetchScalarGridSpec(
            num_scalar_prefetch=0,
            grid=(B,),
            in_specs=[
                pl.BlockSpec((None, T, D), lambda b: (b, 0, 0)),   # x (per-batch tile)
                pl.BlockSpec((D, 3 * A), lambda b: (0, 0)),        # packed QKV weight (DMA'd once)
                pl.BlockSpec((1, 3 * A), lambda b: (0, 0)),        # packed QKV bias
                pl.BlockSpec((A, D), lambda b: (0, 0)),            # wo
                pl.BlockSpec((1, D), lambda b: (0, 0)),            # bo
            ],
            out_specs=out_specs,
        ),
        compiler_params=pltpu.CompilerParams(
            dimension_semantics=("parallel",),
            vmem_limit_bytes=64 * 1024 * 1024),
    )(x, w_qkv, b_qkv, wo, bo)

    if output_attentions:
        out, probs = results
        return out, probs                # probs: [B, H, T, T] (torch.stack(dim=1))
    return results, None


# ---------------------------------------------------------------------------
# Pure-JAX reference (per-head, f32 — mirrors the PyTorch module)
# ---------------------------------------------------------------------------
def _reference(x, params):
    wq, wk, wv = params["wq"], params["wk"], params["wv"]
    bq, bk, bv = params["bq"], params["bk"], params["bv"]
    H, D, dh = wq.shape
    outs, probs_all = [], []
    for h in range(H):
        q = x @ wq[h] + bq[h]
        k = x @ wk[h] + bk[h]
        v = x @ wv[h] + bv[h]
        s = (q @ jnp.swapaxes(k, -1, -2)) / math.sqrt(dh)
        p = jax.nn.softmax(s, axis=-1)
        probs_all.append(p)
        outs.append(p @ v)
    cat = jnp.concatenate(outs, axis=-1)
    out = cat @ params["wo"] + params["bo"]
    return out, jnp.stack(probs_all, axis=1)


# ---------------------------------------------------------------------------
def _init_params(key, hidden_size, num_heads):
    dh = hidden_size // num_heads
    A = num_heads * dh
    ks = jax.random.split(key, 8)
    scale = 0.02
    return {
        "wq": scale * jax.random.normal(ks[0], (num_heads, hidden_size, dh), jnp.float32),
        "wk": scale * jax.random.normal(ks[1], (num_heads, hidden_size, dh), jnp.float32),
        "wv": scale * jax.random.normal(ks[2], (num_heads, hidden_size, dh), jnp.float32),
        "bq": scale * jax.random.normal(ks[3], (num_heads, 1, dh), jnp.float32),
        "bk": scale * jax.random.normal(ks[4], (num_heads, 1, dh), jnp.float32),
        "bv": scale * jax.random.normal(ks[5], (num_heads, 1, dh), jnp.float32),
        "wo": scale * jax.random.normal(ks[6], (A, hidden_size), jnp.float32),
        "bo": scale * jax.random.normal(ks[7], (1, hidden_size), jnp.float32),
    }


if __name__ == "__main__":
    B, T = 2, 8
    hidden_size, num_heads = 32, 4

    key = jax.random.PRNGKey(0)
    kx, kp = jax.random.split(key)
    x = jax.random.normal(kx, (B, T, hidden_size), jnp.float32)
    params = _init_params(kp, hidden_size, num_heads)

    ref_out, ref_probs = _reference(x, params)

    # Common path: no attention probs computed or written.
    out_fast, none_probs = multi_head_attention(x, params, output_attentions=False)
    out_fast = jax.block_until_ready(out_fast)
    assert none_probs is None
    assert out_fast.shape == (B, T, hidden_size)
    assert jnp.allclose(out_fast, ref_out, atol=2e-3, rtol=2e-2), "out mismatch (fast path)"

    # Probs path.
    out, probs = multi_head_attention(x, params, output_attentions=True)
    out = jax.block_until_ready(out)
    probs = jax.block_until_ready(probs)
    assert out.shape == (B, T, hidden_size)
    assert probs.shape == (B, num_heads, T, T)
    assert jnp.allclose(out, ref_out, atol=2e-3, rtol=2e-2), "out mismatch (probs path)"
    assert jnp.allclose(probs, ref_probs, atol=5e-3, rtol=5e-2), "probs mismatch"

    print("KERNEL_OK")
</pallas_src>

<mosaic_0001>
module attributes {stable_mosaic.version = 11 : i64} {
  func.func @_mha_fused_kernel(%arg0: i32, %arg1: memref<1x8x32xf32, #tpu.memory_space<vmem>>, %arg2: memref<32x96xf32, #tpu.memory_space<vmem>>, %arg3: memref<1x96xf32, #tpu.memory_space<vmem>>, %arg4: memref<32x32xf32, #tpu.memory_space<vmem>>, %arg5: memref<1x32xf32, #tpu.memory_space<vmem>>, %arg6: memref<1x8x32xf32, #tpu.memory_space<vmem>>) attributes {dimension_semantics = [#tpu.dimension_semantics<parallel>], iteration_bounds = array<i64: 2>, scalar_prefetch = 0 : i64, scratch_operands = 0 : i64, tpu.core_type = #tpu.core_type<tc>, window_params = [{transform_indices = @transform_0, window_bounds = array<i64: 1, 8, 32>}, {pipeline_mode = #tpu.pipeline_mode<synchronous>, transform_indices = @transform_1, window_bounds = array<i64: 32, 96>}, {pipeline_mode = #tpu.pipeline_mode<synchronous>, transform_indices = @transform_2, window_bounds = array<i64: 1, 96>}, {pipeline_mode = #tpu.pipeline_mode<synchronous>, transform_indices = @transform_3, window_bounds = array<i64: 32, 32>}, {pipeline_mode = #tpu.pipeline_mode<synchronous>, transform_indices = @transform_4, window_bounds = array<i64: 1, 32>}, {transform_indices = @transform_5, window_bounds = array<i64: 1, 8, 32>}]} {
    %c0 = arith.constant 0 : index
    %c0_0 = arith.constant 0 : index
    %c0_1 = arith.constant 0 : index
    %0 = vector.load %arg1[%c0, %c0_0, %c0_1] : memref<1x8x32xf32, #tpu.memory_space<vmem>>, vector<1x8x32xf32>
    %1 = vector.shape_cast %0 : vector<1x8x32xf32> to vector<8x32xf32>
    %2 = arith.truncf %1 : vector<8x32xf32> to vector<8x32xbf16>
    %c0_2 = arith.constant 0 : index
    %c0_3 = arith.constant 0 : index
    %3 = vector.load %arg2[%c0_2, %c0_3] : memref<32x96xf32, #tpu.memory_space<vmem>>, vector<32x96xf32>
    %4 = arith.truncf %3 : vector<32x96xf32> to vector<32x96xbf16>
    %c0_4 = arith.constant 0 : index
    %c0_5 = arith.constant 0 : index
    %5 = vector.load %arg3[%c0_4, %c0_5] : memref<1x96xf32, #tpu.memory_space<vmem>>, vector<1x96xf32>
    %cst = arith.constant dense<0.000000e+00> : vector<8x96xf32>
    %6 = tpu.matmul %2, %4, %cst {dimension_numbers = #tpu.dot_dimension_numbers<[1], [0], [0], [1], [0, 0, 1, 1], [], []>} : vector<8x32xbf16>, vector<32x96xbf16>, vector<8x96xf32> -> vector<8x96xf32>
    %7 = vector.broadcast %5 : vector<1x96xf32> to vector<8x96xf32>
    %8 = arith.addf %6, %7 : vector<8x96xf32>
    %9 = vector.extract_strided_slice %8 {offsets = [0, 0], sizes = [8, 32], strides = [1, 1]} : vector<8x96xf32> to vector<8x32xf32>
    %cst_6 = arith.constant 0.353553385 : f32
    %10 = vector.broadcast %cst_6 : f32 to vector<8x32xf32>
    %11 = arith.mulf %9, %10 : vector<8x32xf32>
    %12 = arith.truncf %11 : vector<8x32xf32> to vector<8x32xbf16>
    %13 = vector.extract_strided_slice %8 {offsets = [0, 32], sizes = [8, 32], strides = [1, 1]} : vector<8x96xf32> to vector<8x32xf32>
    %14 = arith.truncf %13 : vector<8x32xf32> to vector<8x32xbf16>
    %15 = vector.extract_strided_slice %8 {offsets = [0, 64], sizes = [8, 32], strides = [1, 1]} : vector<8x96xf32> to vector<8x32xf32>
    %16 = arith.truncf %15 : vector<8x32xf32> to vector<8x32xbf16>
    %17 = vector.extract_strided_slice %12 {offsets = [0, 0], sizes = [8, 8], strides = [1, 1]} : vector<8x32xbf16> to vector<8x8xbf16>
    %18 = vector.extract_strided_slice %14 {offsets = [0, 0], sizes = [8, 8], strides = [1, 1]} : vector<8x32xbf16> to vector<8x8xbf16>
    %19 = vector.extract_strided_slice %16 {offsets = [0, 0], sizes = [8, 8], strides = [1, 1]} : vector<8x32xbf16> to vector<8x8xbf16>
    %20 = tpu.transpose %18, [1, 0] : vector<8x8xbf16> -> vector<8x8xbf16>
    %cst_7 = arith.constant dense<0.000000e+00> : vector<8x8xf32>
    %21 = tpu.matmul %17, %20, %cst_7 {dimension_numbers = #tpu.dot_dimension_numbers<[1], [0], [0], [1], [0, 0, 1, 1], [], []>} : vector<8x8xbf16>, vector<8x8xbf16>, vector<8x8xf32> -> vector<8x8xf32>
    %cst_8 = arith.constant dense<0xFF800000> : vector<8xf32>
    %22 = vector.multi_reduction <maximumf>, %21, %cst_8 [1] : vector<8x8xf32> to vector<8xf32>
    %23 = vector.shape_cast %22 : vector<8xf32> to vector<8x1xf32>
    %24 = vector.broadcast %23 : vector<8x1xf32> to vector<8x8xf32>
    %25 = arith.subf %21, %24 : vector<8x8xf32>
    %26 = math.exp %25 : vector<8x8xf32>
    %cst_9 = arith.constant dense<0.000000e+00> : vector<8xf32>
    %27 = vector.multi_reduction <add>, %26, %cst_9 [1] : vector<8x8xf32> to vector<8xf32>
    %28 = vector.shape_cast %27 : vector<8xf32> to vector<8x1xf32>
    %29 = tpu.reciprocal %28 {approx = true} : vector<8x1xf32> -> vector<8x1xf32>
    %30 = vector.broadcast %29 : vector<8x1xf32> to vector<8x8xf32>
    %31 = arith.mulf %26, %30 : vector<8x8xf32>
    %32 = arith.truncf %31 : vector<8x8xf32> to vector<8x8xbf16>
    %cst_10 = arith.constant dense<0.000000e+00> : vector<8x8xf32>
    %33 = tpu.matmul %32, %19, %cst_10 {dimension_numbers = #tpu.dot_dimension_numbers<[1], [0], [0], [1], [0, 0, 1, 1], [], []>} : vector<8x8xbf16>, vector<8x8xbf16>, vector<8x8xf32> -> vector<8x8xf32>
    %34 = vector.extract_strided_slice %12 {offsets = [0, 8], sizes = [8, 8], strides = [1, 1]} : vector<8x32xbf16> to vector<8x8xbf16>
    %35 = vector.extract_strided_slice %14 {offsets = [0, 8], sizes = [8, 8], strides = [1, 1]} : vector<8x32xbf16> to vector<8x8xbf16>
    %36 = vector.extract_strided_slice %16 {offsets = [0, 8], sizes = [8, 8], strides = [1, 1]} : vector<8x32xbf16> to vector<8x8xbf16>
    %37 = tpu.transpose %35, [1, 0] : vector<8x8xbf16> -> vector<8x8xbf16>
    %cst_11 = arith.constant dense<0.000000e+00> : vector<8x8xf32>
    %38 = tpu.matmul %34, %37, %cst_11 {dimension_numbers = #tpu.dot_dimension_numbers<[1], [0], [0], [1], [0, 0, 1, 1], [], []>} : vector<8x8xbf16>, vector<8x8xbf16>, vector<8x8xf32> -> vector<8x8xf32>
    %cst_12 = arith.constant dense<0xFF800000> : vector<8xf32>
    %39 = vector.multi_reduction <maximumf>, %38, %cst_12 [1] : vector<8x8xf32> to vector<8xf32>
    %40 = vector.shape_cast %39 : vector<8xf32> to vector<8x1xf32>
    %41 = vector.broadcast %40 : vector<8x1xf32> to vector<8x8xf32>
    %42 = arith.subf %38, %41 : vector<8x8xf32>
    %43 = math.exp %42 : vector<8x8xf32>
    %cst_13 = arith.constant dense<0.000000e+00> : vector<8xf32>
    %44 = vector.multi_reduction <add>, %43, %cst_13 [1] : vector<8x8xf32> to vector<8xf32>
    %45 = vector.shape_cast %44 : vector<8xf32> to vector<8x1xf32>
    %46 = tpu.reciprocal %45 {approx = true} : vector<8x1xf32> -> vector<8x1xf32>
    %47 = vector.broadcast %46 : vector<8x1xf32> to vector<8x8xf32>
    %48 = arith.mulf %43, %47 : vector<8x8xf32>
    %49 = arith.truncf %48 : vector<8x8xf32> to vector<8x8xbf16>
    %cst_14 = arith.constant dense<0.000000e+00> : vector<8x8xf32>
    %50 = tpu.matmul %49, %36, %cst_14 {dimension_numbers = #tpu.dot_dimension_numbers<[1], [0], [0], [1], [0, 0, 1, 1], [], []>} : vector<8x8xbf16>, vector<8x8xbf16>, vector<8x8xf32> -> vector<8x8xf32>
    %51 = vector.extract_strided_slice %12 {offsets = [0, 16], sizes = [8, 8], strides = [1, 1]} : vector<8x32xbf16> to vector<8x8xbf16>
    %52 = vector.extract_strided_slice %14 {offsets = [0, 16], sizes = [8, 8], strides = [1, 1]} : vector<8x32xbf16> to vector<8x8xbf16>
    %53 = vector.extract_strided_slice %16 {offsets = [0, 16], sizes = [8, 8], strides = [1, 1]} : vector<8x32xbf16> to vector<8x8xbf16>
    %54 = tpu.transpose %52, [1, 0] : vector<8x8xbf16> -> vector<8x8xbf16>
    %cst_15 = arith.constant dense<0.000000e+00> : vector<8x8xf32>
    %55 = tpu.matmul %51, %54, %cst_15 {dimension_numbers = #tpu.dot_dimension_numbers<[1], [0], [0], [1], [0, 0, 1, 1], [], []>} : vector<8x8xbf16>, vector<8x8xbf16>, vector<8x8xf32> -> vector<8x8xf32>
    %cst_16 = arith.constant dense<0xFF800000> : vector<8xf32>
    %56 = vector.multi_reduction <maximumf>, %55, %cst_16 [1] : vector<8x8xf32> to vector<8xf32>
    %57 = vector.shape_cast %56 : vector<8xf32> to vector<8x1xf32>
    %58 = vector.broadcast %57 : vector<8x1xf32> to vector<8x8xf32>
    %59 = arith.subf %55, %58 : vector<8x8xf32>
    %60 = math.exp %59 : vector<8x8xf32>
    %cst_17 = arith.constant dense<0.000000e+00> : vector<8xf32>
    %61 = vector.multi_reduction <add>, %60, %cst_17 [1] : vector<8x8xf32> to vector<8xf32>
    %62 = vector.shape_cast %61 : vector<8xf32> to vector<8x1xf32>
    %63 = tpu.reciprocal %62 {approx = true} : vector<8x1xf32> -> vector<8x1xf32>
    %64 = vector.broadcast %63 : vector<8x1xf32> to vector<8x8xf32>
    %65 = arith.mulf %60, %64 : vector<8x8xf32>
    %66 = arith.truncf %65 : vector<8x8xf32> to vector<8x8xbf16>
    %cst_18 = arith.constant dense<0.000000e+00> : vector<8x8xf32>
    %67 = tpu.matmul %66, %53, %cst_18 {dimension_numbers = #tpu.dot_dimension_numbers<[1], [0], [0], [1], [0, 0, 1, 1], [], []>} : vector<8x8xbf16>, vector<8x8xbf16>, vector<8x8xf32> -> vector<8x8xf32>
    %68 = vector.extract_strided_slice %12 {offsets = [0, 24], sizes = [8, 8], strides = [1, 1]} : vector<8x32xbf16> to vector<8x8xbf16>
    %69 = vector.extract_strided_slice %14 {offsets = [0, 24], sizes = [8, 8], strides = [1, 1]} : vector<8x32xbf16> to vector<8x8xbf16>
    %70 = vector.extract_strided_slice %16 {offsets = [0, 24], sizes = [8, 8], strides = [1, 1]} : vector<8x32xbf16> to vector<8x8xbf16>
    %71 = tpu.transpose %69, [1, 0] : vector<8x8xbf16> -> vector<8x8xbf16>
    %cst_19 = arith.constant dense<0.000000e+00> : vector<8x8xf32>
    %72 = tpu.matmul %68, %71, %cst_19 {dimension_numbers = #tpu.dot_dimension_numbers<[1], [0], [0], [1], [0, 0, 1, 1], [], []>} : vector<8x8xbf16>, vector<8x8xbf16>, vector<8x8xf32> -> vector<8x8xf32>
    %cst_20 = arith.constant dense<0xFF800000> : vector<8xf32>
    %73 = vector.multi_reduction <maximumf>, %72, %cst_20 [1] : vector<8x8xf32> to vector<8xf32>
    %74 = vector.shape_cast %73 : vector<8xf32> to vector<8x1xf32>
    %75 = vector.broadcast %74 : vector<8x1xf32> to vector<8x8xf32>
    %76 = arith.subf %72, %75 : vector<8x8xf32>
    %77 = math.exp %76 : vector<8x8xf32>
    %cst_21 = arith.constant dense<0.000000e+00> : vector<8xf32>
    %78 = vector.multi_reduction <add>, %77, %cst_21 [1] : vector<8x8xf32> to vector<8xf32>
    %79 = vector.shape_cast %78 : vector<8xf32> to vector<8x1xf32>
    %80 = tpu.reciprocal %79 {approx = true} : vector<8x1xf32> -> vector<8x1xf32>
    %81 = vector.broadcast %80 : vector<8x1xf32> to vector<8x8xf32>
    %82 = arith.mulf %77, %81 : vector<8x8xf32>
    %83 = arith.truncf %82 : vector<8x8xf32> to vector<8x8xbf16>
    %cst_22 = arith.constant dense<0.000000e+00> : vector<8x8xf32>
    %84 = tpu.matmul %83, %70, %cst_22 {dimension_numbers = #tpu.dot_dimension_numbers<[1], [0], [0], [1], [0, 0, 1, 1], [], []>} : vector<8x8xbf16>, vector<8x8xbf16>, vector<8x8xf32> -> vector<8x8xf32>
    %85 = tpu.concatenate %33, %50, %67, %84 in 1 : vector<8x8xf32>, vector<8x8xf32>, vector<8x8xf32>, vector<8x8xf32> -> vector<8x32xf32>
    %c0_23 = arith.constant 0 : index
    %c0_24 = arith.constant 0 : index
    %86 = vector.load %arg4[%c0_23, %c0_24] : memref<32x32xf32, #tpu.memory_space<vmem>>, vector<32x32xf32>
    %87 = arith.truncf %86 : vector<32x32xf32> to vector<32x32xbf16>
    %c0_25 = arith.constant 0 : index
    %c0_26 = arith.constant 0 : index
    %88 = vector.load %arg5[%c0_25, %c0_26] : memref<1x32xf32, #tpu.memory_space<vmem>>, vector<1x32xf32>
    %89 = arith.truncf %85 : vector<8x32xf32> to vector<8x32xbf16>
    %cst_27 = arith.constant dense<0.000000e+00> : vector<8x32xf32>
    %90 = tpu.matmul %89, %87, %cst_27 {dimension_numbers = #tpu.dot_dimension_numbers<[1], [0], [0], [1], [0, 0, 1, 1], [], []>} : vector<8x32xbf16>, vector<32x32xbf16>, vector<8x32xf32> -> vector<8x32xf32>
    %91 = vector.broadcast %88 : vector<1x32xf32> to vector<8x32xf32>
    %92 = arith.addf %90, %91 : vector<8x32xf32>
    %c0_28 = arith.constant 0 : index
    %c0_29 = arith.constant 0 : index
    %c0_30 = arith.constant 0 : index
    %93 = vector.load %arg6[%c0_28, %c0_29, %c0_30] : memref<1x8x32xf32, #tpu.memory_space<vmem>>, vector<1x8x32xf32>
    %94 = vector.shape_cast %93 : vector<1x8x32xf32> to vector<8x32xf32>
    %95 = vector.shape_cast %92 : vector<8x32xf32> to vector<1x8x32xf32>
    tpu.vector_store %arg6[%c0_28, %c0_29, %c0_30], %95 {strides = array<i32>} : memref<1x8x32xf32, #tpu.memory_space<vmem>>, vector<1x8x32xf32>,
    return
  }
  func.func @transform_0(%arg0: i32) -> (i32, i32, i32) {
    %c0_i32 = arith.constant 0 : i32
    %c0_i32_0 = arith.constant 0 : i32
    %c0_i32_1 = arith.constant 0 : i32
    return %arg0, %c0_i32, %c0_i32_0 : i32, i32, i32
  }
  func.func @transform_1(%arg0: i32) -> (i32, i32) {
    %c0_i32 = arith.constant 0 : i32
    %c0_i32_0 = arith.constant 0 : i32
    %c0_i32_1 = arith.constant 0 : i32
    return %c0_i32, %c0_i32_0 : i32, i32
  }
  func.func @transform_2(%arg0: i32) -> (i32, i32) {
    %c0_i32 = arith.constant 0 : i32
    %c0_i32_0 = arith.constant 0 : i32
    %c0_i32_1 = arith.constant 0 : i32
    return %c0_i32, %c0_i32_0 : i32, i32
  }
  func.func @transform_3(%arg0: i32) -> (i32, i32) {
    %c0_i32 = arith.constant 0 : i32
    %c0_i32_0 = arith.constant 0 : i32
    %c0_i32_1 = arith.constant 0 : i32
    return %c0_i32, %c0_i32_0 : i32, i32
  }
  func.func @transform_4(%arg0: i32) -> (i32, i32) {
    %c0_i32 = arith.constant 0 : i32
    %c0_i32_0 = arith.constant 0 : i32
    %c0_i32_1 = arith.constant 0 : i32
    return %c0_i32, %c0_i32_0 : i32, i32
  }
  func.func @transform_5(%arg0: i32) -> (i32, i32, i32) {
    %c0_i32 = arith.constant 0 : i32
    %c0_i32_0 = arith.constant 0 : i32
    %c0_i32_1 = arith.constant 0 : i32
    return %arg0, %c0_i32, %c0_i32_0 : i32, i32, i32
  }
}

</mosaic_0001>

<bundles_post_ra>
// kernel: tpu_custom_call.1
= control target key start
LH: loop header
LB: loop body
LE: loop exit
PB: predicated region body
PF: predicated region fallthrough
CT: control target
= control target key end

     0   :  { %10 = vsyncpa [#allocation3], 0  ;;  %s1862_s0 = inlined_call_operand.hbm [shape: f32[2,8,32], index: 0, kind: input, shape index: {}]   ;;  %s1863_s1 = inlined_call_operand.hbm [shape: f32[32,96], index: 1, kind: input, shape index: {}]   ;;  %s1864_s2 = inlined_call_operand.hbm [shape: f32[1,96], index: 2, kind: input, shape index: {}]   ;;  %s1865_s3 = inlined_call_operand.hbm [shape: f32[32,32], index: 3, kind: input, shape index: {}]   ;;  %s1866_s4 = inlined_call_operand.hbm [shape: f32[1,32], index: 4, kind: input, shape index: {}]   ;;  %s1867_s5 = inlined_call_operand.hbm [shape: f32[2,8,32], index: 5, kind: output, shape index: {}]  }
   0x1   :  { %12 = vsyncpa [#allocation3 + $0x1], 0 }
   0x2   :  { %13 = vsyncpa [#allocation6], 0 }
   0x3   :  { %14 = vsyncpa [#allocation9], 0 }
   0x4   :  { %15 = vsyncpa [#allocation4], 0 }
   0x5   :  { %17 = vsyncpa [#allocation4 + $0x1], 0  ;;  %s1507_s18 = smov 0   ;;  %s1509_s19 = smov 0  }
   0x6   :  { %s1511_s20 = smov 0   ;;  %s1513_s21 = smov 0  }
   0x7 LB: > { %s1453_s22 = smov [#allocation5]   ;;  %s1528_s24 = sadd.s32 4294967295, %s1451_s21   ;;  %s1451_s21 = sphi %s1513_s21, %s1891_s21   ;;  %s1447_s20 = sphi %s1511_s20, %s1890_s20   ;;  %s1443_s19 = sphi %s1509_s19, %s1889_s19   ;;  %s1439_s18 = sphi %s1507_s18, %s1888_s18  }
   0x8   : > { %s176_s23 = sshll.u32 %s1453_s22, 4  ;;  %p997_p0 = scmp.ge.s32.totalorder %s1451_s21, 1  ;;  %s1533_s23 = int_to_ptr.vmem [resolvable:$true] %s176_s23 }
   0x9   : > { %p1868_p1 = scmp.eq.s32.totalorder %s1528_s24, 0  ;;  %p164_p2 = scmp.lt.s32.totalorder %s1451_s21, 3 }
   0xa   : > { %s1454_s26 = smov [#allocation8]   ;;  %s1455_s29 = smov [#allocation7]  }
   0xb   : > { %p1535_p3 = pnand %p997_p0, %p164_p2  ;;  %s200_s27 = sshll.u32 %s1454_s26, 4  ;;  %s1548_s27 = int_to_ptr.vmem [resolvable:$true] %s200_s27 }
   0xc   : > { %s190_s30 = sshll.u32 %s1455_s29, 4  ;;  %s1235_s8 = scalar_lea.hbm %s1863_s1, 512  ;;  %s1550_s30 = int_to_ptr.vmem [resolvable:$true] %s190_s30 }
   0xd   : > { %s1871_s25 = scalar_select %p1535_p3, 1, 0 }
   0xe   : > { %p1134_p5 = pneg %p1535_p3  ;;  %p1236_p7 = scmp.ne.s32.totalorder %s1863_s1, %s1235_s8 }
   0xf   : > { %p1242_p11 = scmp.lt.u32.totalorder %s1235_s8, %s1863_s1 }
  0x10   : > { %p1544_p6 = pnand %p1134_p5, %p1868_p1 }
  0x12   : > { %p1560_p8 = pneg %p1544_p6 }
  0x14   : > { %p1238_p9 = pnand %p1560_p8, %p1236_p7 }
  0x16   : > { %p1239_p10 = pneg %p1238_p9 }
  0x18   : > { %p1244_p12 = pnand %p1242_p11, %p1239_p10 }
  0x1a   : > { %1247 = shalt.err (!%p1244_p12)
}
  0x1b   : > { %s1248_s14 = scalar_lea.vmem %s1533_s23, 512  ;;  %p1256_p5 = scmp.lt.s32.totalorder %s1533_s23, %s1533_s23 }
  0x1c   : > { %p1249_p13 = scmp.ne.s32.totalorder %s1533_s23, %s1248_s14  ;;  %p1257_p4 = scmp.lt.s32.totalorder %s1248_s14, %s1248_s14 }
  0x1e   : > { %p1251_p0 = pnand %p1249_p13, %p1560_p8  ;;  %p1258_p7 = por %p1257_p4, %p1256_p5 }
  0x20   : > { %p1252_p2 = pneg %p1251_p0 }
  0x22   : > { %p1259_p9 = pnand %p1258_p7, %p1252_p2 }
  0x24   : > { %1262 = shalt.err (!%p1259_p9)
}
  0x25   : > { %s1456_s15 = smov 128   ;;  %s1457_s16 = smov 8  }
  0x26   : > { %1137 = dma.hbm_to_vmem [thread:$0]  (!%p1544_p6), %s1863_s1, 512, %s1533_s23, [#allocation6], %s1456_s15, %s1456_s15, %s1457_s16  }
  0x27   : > { %s1263_s6 = scalar_lea.hbm %s1865_s3, 512 }
  0x28   : > { %p1264_p4 = scmp.ne.s32.totalorder %s1865_s3, %s1263_s6  ;;  %p1270_p12 = scmp.lt.u32.totalorder %s1263_s6, %s1865_s3 }
  0x2a   : > { %p1266_p10 = pnand %p1264_p4, %p1560_p8 }
  0x2c   : > { %p1267_p11 = pneg %p1266_p10 }
  0x2e   : > { %p1272_p13 = pnand %p1270_p12, %p1267_p11 }
  0x30   : > { %1275 = shalt.err (!%p1272_p13)
}
  0x31   : > { %s1276_s23 = scalar_lea.vmem %s1548_s27, 512  ;;  %p1284_p7 = scmp.lt.s32.totalorder %s1548_s27, %s1548_s27 }
  0x32   : > { %p1277_p0 = scmp.ne.s32.totalorder %s1548_s27, %s1276_s23  ;;  %p1285_p9 = scmp.lt.s32.totalorder %s1276_s23, %s1276_s23 }
  0x34   : > { %p1279_p2 = pnand %p1277_p0, %p1560_p8  ;;  %p1286_p4 = por %p1285_p9, %p1284_p7 }
  0x36   : > { %p1280_p5 = pneg %p1279_p2 }
  0x38   : > { %p1287_p10 = pnand %p1286_p4, %p1280_p5 }
  0x3a   : > { %1290 = shalt.err (!%p1287_p10)
}
  0x3b   : > { %1143 = dma.hbm_to_vmem [thread:$0]  (!%p1544_p6), %s1865_s3, 512, %s1548_s27, [#allocation9], %s1456_s15, %s1456_s15, %s1457_s16  }
  0x3c   : > { %s1291_s22 = scalar_lea.hbm %s1864_s2, 16 }
  0x3d   : > { %p1292_p11 = scmp.ne.s32.totalorder %s1864_s2, %s1291_s22  ;;  %p1298_p0 = scmp.lt.u32.totalorder %s1291_s22, %s1864_s2 }
  0x3f   : > { %p1294_p12 = pnand %p1292_p11, %p1560_p8 }
  0x41   : > { %p1295_p13 = pneg %p1294_p12 }
  0x43   : > { %p1300_p2 = pnand %p1298_p0, %p1295_p13 }
  0x45   : > { %1303 = shalt.err (!%p1300_p2)
}
  0x46   : > { %s1304_s27 = scalar_lea.vmem %s1550_s30, 16  ;;  %s1311_s15 = scalar_lea.vmem %s1550_s30, 32 }
  0x47   : > { %p1305_p5 = scmp.ne.s32.totalorder %s1550_s30, %s1304_s27  ;;  %p1312_p4 = scmp.lt.s32.totalorder %s1550_s30, %s1550_s30 }
  0x48   : > { %p1313_p10 = scmp.lt.s32.totalorder %s1311_s15, %s1304_s27 }
  0x49   : > { %p1307_p7 = pnand %p1305_p5, %p1560_p8 }
  0x4a   : > { %p1314_p11 = por %p1313_p10, %p1312_p4 }
  0x4b   : > { %p1308_p9 = pneg %p1307_p7 }
  0x4d   : > { %p1315_p12 = pnand %p1314_p11, %p1308_p9 }
  0x4f   : > { %1318 = shalt.err (!%p1315_p12)
}
  0x50   : > { %1140 = dma.hbm_to_vmem [thread:$0]  (!%p1544_p6), %s1864_s2, 16, %s1550_s30, [#allocation6]  }
  0x51   : > { %s1458_s9 = smov [#allocation10]   ;;  %s1319_s13 = scalar_lea.hbm %s1866_s4, 16 }
  0x52   : > { %s214_s10 = sshll.u32 %s1458_s9, 4  ;;  %p1320_p13 = scmp.ne.s32.totalorder %s1866_s4, %s1319_s13  ;;  %s215_s10 = int_to_ptr.vmem [resolvable:$true] %s214_s10 }
  0x53   : > { %p1326_p5 = scmp.lt.u32.totalorder %s1319_s13, %s1866_s4 }
  0x54   : > { %p1322_p0 = pnand %p1320_p13, %p1560_p8 }
  0x56   : > { %p1323_p2 = pneg %p1322_p0 }
  0x58   : > { %p1328_p7 = pnand %p1326_p5, %p1323_p2 }
  0x5a   : > { %1331 = shalt.err (!%p1328_p7)
}
  0x5b   : > { %s1332_s30 = scalar_lea.vmem %s215_s10, 16  ;;  %s1339_s29 = scalar_lea.vmem %s215_s10, 32 }
  0x5c   : > { %p1333_p9 = scmp.ne.s32.totalorder %s215_s10, %s1332_s30  ;;  %p1340_p11 = scmp.lt.s32.totalorder %s215_s10, %s215_s10 }
  0x5d   : > { %p1341_p12 = scmp.lt.s32.totalorder %s1339_s29, %s1332_s30 }
  0x5e   : > { %p1335_p4 = pnand %p1333_p9, %p1560_p8 }
  0x5f   : > { %p1342_p1 = por %p1341_p12, %p1340_p11 }
  0x60   : > { %p1336_p10 = pneg %p1335_p4 }
  0x62   : > { %p1343_p3 = pnand %p1342_p1, %p1336_p10 }
  0x64   : > { %1346 = shalt.err (!%p1343_p3)
}
  0x65   : > { %1146 = dma.hbm_to_vmem [thread:$0]  (!%p1544_p6), %s1866_s4, 16, %s215_s10, [#allocation9]  }
  0x66   : > { %s996_s11 = sadd.s32 4294967294, %s1451_s21   ;;  %s1648_s28 = sadd.s32 1, %s1451_s21  }
  0x67   : > { %s27_s27 = ssub.s32 %s1451_s21, %s1648_s28  ;;  %s30_s15 = sadd.s32 1, %s1447_s20 }
  0x68   : > { %p28_p1 = scmp.eq.s32.totalorder %s27_s27, 0  ;;  %p37_p3 = scmp.ne.s32.totalorder %s1447_s20, %s1443_s19 }
  0x69   : > { %p38_p8 = scmp.eq.s32.totalorder %s1451_s21, 0  ;;  %p43_p13 = scmp.ne.s32.totalorder %s1443_s19, %s1439_s18 }
  0x6a   : > { %s1659_s16 = scalar_select %p28_p1, %s1447_s20, %s30_s15  }
  0x6b   : > { %p1661_p0 = por %p38_p8, %p37_p3  ;;  %p1875_p2 = scmp.eq.s32.totalorder %s1528_s24, 0 }
  0x6c   : > { %p151_p5 = scmp.eq.s32.totalorder %s1528_s24, 1  ;;  %p157_p7 = scmp.eq.s32.totalorder %s996_s11, 1 }
  0x6d   : > { %p1667_p6 = por %p1875_p2, %p43_p13  ;;  %p1159_p9 = scmp.lt.s32.totalorder %s1451_s21, 2 }
  0x6e   : > { %s225_s10 = sand.u32 1, %s1447_s20   ;;  %p1674_p4 = por %p151_p5, %p37_p3 }
  0x6f   : > { %p1678_p10 = por %p157_p7, %p43_p13  ;;  %s1003_s13 = sshll.u32 %s225_s10, 3 }
  0x70   : > { %s1877_s23 = scalar_select %p1674_p4, 1, 0 }
  0x71   : > { %s1878_s12 = scalar_select %p1678_p10, 1, 0 }
  0x72   : > { %s1004_s14 = sshll.u32 %s1451_s21, 7  ;;  %s229_s30 = scalar_lea.vmem [#allocation2], %s1003_s13 }
  0x73   : > { %s1686_s26 = scalar_lea.hbm %s1862_s0, %s1004_s14  ;;  %s236_s29 = sshll.u32 %s229_s30, 4  ;;  %s1688_s29 = int_to_ptr.vmem [resolvable:$true] %s236_s29 }
  0x74   : > { %p1692_p11 = pnand %p1159_p9, %p1661_p0  ;;  %s226_s7 = scalar_lea.sflag [#allocation3], %s225_s10 }
  0x75   : > { %s1347_s11 = scalar_lea.hbm %s1686_s26, 128  ;;  %s1352_s13 = scalar_lea.hbm %s1862_s0, 256 }
  0x76   : > { %p1348_p12 = scmp.ne.s32.totalorder %s1686_s26, %s1347_s11  ;;  %p1349_p1 = pneg %p1692_p11 }
  0x77   : > { %p1353_p13 = scmp.lt.u32.totalorder %s1686_s26, %s1862_s0  ;;  %p1354_p0 = scmp.lt.u32.totalorder %s1352_s13, %s1347_s11 }
  0x78   : > { %p1350_p3 = pnand %p1349_p1, %p1348_p12  ;;  %p1356_p5 = scmp.lt.u32.totalorder %s1347_s11, %s1686_s26 }
  0x79   : > { %p1355_p2 = por %p1354_p0, %p1353_p13 }
  0x7a   : > { %p1351_p8 = pneg %p1350_p3 }
  0x7b   : > { %p1357_p7 = por %p1356_p5, %p1355_p2 }
  0x7d   : > { %p1358_p9 = pnand %p1357_p7, %p1351_p8 }
  0x7f   : > { %1361 = shalt.err (!%p1358_p9)
}
  0x80   : > { %s1362_s10 = scalar_lea.vmem %s1688_s29, 128  ;;  %s1459_s17 = smov [#allocation2]  }
  0x81   : > { %p1363_p12 = scmp.ne.s32.totalorder %s1688_s29, %s1362_s10  ;;  %s1367_s22 = sshll.u32 %s1459_s17, 4  ;;  %s1368_s22 = int_to_ptr.vmem [resolvable:$false] %s1367_s22 }
  0x82   : > { %s1369_s30 = scalar_lea.vmem %s1368_s22, 256  ;;  %p1370_p4 = scmp.lt.s32.totalorder %s1688_s29, %s1368_s22 }
  0x83   : > { %p1365_p3 = pnand %p1363_p12, %p1349_p1  ;;  %p1371_p13 = scmp.lt.s32.totalorder %s1369_s30, %s1362_s10 }
  0x85   : > { %p1366_p10 = pneg %p1365_p3  ;;  %p1372_p0 = por %p1371_p13, %p1370_p4 }
  0x87   : > { %p1373_p2 = pnand %p1372_p0, %p1366_p10 }
  0x89   : > { %1376 = shalt.err (!%p1373_p2)
}
  0x8a   : > { %1150 = dma.hbm_to_vmem [thread:$0]  (!%p1692_p11), %s1686_s26, 128, %s1688_s29, %s226_s7  }
  0x8b   : > { %p1880_p8 = scmp.ne.s32.totalorder %s1871_s25, 0 }
  0x8c   : > { %s1724_s11 = sand.u32 (!%p1880_p8), 1, %s1443_s19  }
  0x8d   : > { %245 = sbr.rel (%p1880_p8) target bundleno = 1652 (0x674), region = 40  ;;  %s1006_s27 = sshll.u32 (!%p1880_p8), %s1724_s11, 3 }
  0x8e   : > { %s248_s15 = scalar_lea.sflag (!%p1880_p8), [#allocation3], %s1724_s11  ;;  %s251_s13 = scalar_lea.vmem (!%p1880_p8), [#allocation2], %s1006_s27 }
  0x94   : > { %1422 = dma.done.wait (%p1667_p6), %s248_s15, 128  }
  0x95   : > { %1424 = vsyncadd (%p1667_p6), %s248_s15, 4294967168  ;;  %p1881_p4 = scmp.eq.s32.totalorder %s1528_s24, 0 }
  0x97   : > { %1426 = dma.done.wait (%p1881_p4), [#allocation6], 528   ;;  %p1882_p10 = pmov %p1881_p4 }
  0x98   : > { %p1883_p11 = pmov %p1881_p4 }
  0x99   : > { %1428 = vsyncadd (%p1882_p10), [#allocation6], 4294966768 }
  0x9a   : > { %1430 = dma.done.wait (%p1883_p11), [#allocation9], 528   ;;  %p1884_p1 = pmov %p1881_p4 }
  0x9b   : > { %v1460_v0 = vmov 0.0   ;;  %vm1461_vm0 = vmmov 0   ;;  %v297_v1 = vld [vmem:[#allocation5] sm:$0xff]  ;;  %v298_v2 = vld [vmem:[#allocation5 + $0x8] sm:$0xff]  ;;  %v299_v3 = vld [vmem:[#allocation5 + $0x10] sm:$0xff]  ;;  %vm310_vm1 = vcmask 261120  }
  0x9c   : > { %1432 = vsyncadd (%p1884_p1), [#allocation9], 4294966768  ;;  %1050 = vmatprep.subr.bf16.mxu0 %v1460_v0  ;;  %1054 = vmatprep.mubr.msk.bf16.mxu0 %vm1461_vm0, %v1460_v0  ;;  %v301_v4 = vpack.c.bf16 %v298_v2, %v297_v1  ;;  %v300_v5 = vld [vmem:[#allocation5 + $0x18] sm:$0xff]  ;;  %v1012_v9 = vld [vmem:[#allocation7] ss:$0 sm:$0xff]  ;;  %s1462_s25 = smov 96  }
  0x9d   : > { %1058 = vmatprep.subr.bf16.mxu1 %v1460_v0  ;;  %1060 = vmatprep.mubr.msk.bf16.mxu1 %vm1461_vm0, %v1460_v0  ;;  %v302_v6 = vpack.c.bf16 %v300_v5, %v299_v3  ;;  %v295_v7 = vld [vmem:[%s251_s13] sm:$0xff]  ;;  %s1463_s9 = smov 120   ;;  %s1464_s26 = smov 88   ;;  %vm360_vm2 = vcmask 64512   ;;  %vm424_vm3 = vcmask 1043456   ;;  %vm812_vm4 = vcmask 130048  }
  0x9e   : > { %1051 = vmatpush3.bf16.msra.mxu0 %v301_v4  ;;  %v296_v8 = vpack.c.bf16 %v295_v7, %v295_v7  ;;  %s1465_s29 = smov 80   ;;  %s1466_s6 = smov 112   ;;  %vm814_vm5 = vcmask 195584  }
  0x9f   : > { %1052 = vmatprep.subr.bf16.mxu0 %v1460_v0  ;;  %s1467_s7 = smov 72   ;;  %s1468_s8 = smov 104  }
  0xa0   : > { %s1469_s14 = smov 56   ;;  %s1470_s10 = smov 64  }
  0xa1   : > { %s1471_s17 = smov 40   ;;  %s1472_s22 = smov 48  }
  0xa2   : > { %1053 = vmatpush3.bf16.msra.mxu0 %v302_v6  ;;  %s1473_s30 = smov 8   ;;  %s1474_s15 = smov 16  }
  0xa3   : > { %1064 = vmatprep.subr.bf16.mxu0 %v1460_v0  ;;  %s1475_s13 = smov 24   ;;  %p1885_p5 = scmp.ne.s32.totalorder %s1877_s23, 0 }
  0xa5   : > { %1055 = vmatmul.mubr.msk.bf16.vlgmr.msra.gmra.mrb[0].mxu0 %vm310_vm1, %v296_v8 }
  0xa6   : > { %1066 = vmatprep.mubr.msk.bf16.mxu0 %vm1461_vm0, %v1460_v0 }
 0x178   : > { %v348_v10 = vpop.f32.mrb[0].mxu0 }
 0x179   : > { %v349_v11 = vadd.f32 %v1012_v9, %v348_v10  ;;  %v1056_v12 = vpop.f32.mrb[1].mxu0 }
 0x17a   : > { %v351_v13 = vpop.f32.mrb[2].mxu0 }
 0x17b   : > { %v354_v14 = vmul.f32 0.35355338, %v349_v11  ;;  %v1753_v15 = vpack.c.bf16 %v349_v11, %v349_v11  ;;  %v1057_v16 = vpop.f32.mrb[3].mxu0 }
 0x17d   : > { %v355_v17 = vpack.c.bf16 %v354_v14, %v354_v14  ;;  %358 = vrot.lane.b32.xlu0 %v1753_v15, %s1462_s25  ;;  %s1025_s25 = sshll.u32 %s1528_s24, 7  ;;  %s875_s24 = scalar_lea.sflag [#allocation4], %s1724_s11 }
 0x17f   : > { %469 = vrot.lane.b32.xlu1 %v355_v17, %s1463_s9  ;;  %s293_s9 = scalar_lea.vmem [#allocation11], %s1006_s27 }
 0x181   : > { %471 = vrot.lane.b32.xlu0 %v1753_v15, %s1464_s26  ;;  %s888_s26 = sshll.u32 %s293_s9, 4  ;;  %s1819_s26 = int_to_ptr.vmem [resolvable:$true] %s888_s26 }
 0x182   : > { %s1377_s27 = scalar_lea.vmem %s1819_s26, 128 }
 0x183   : > { %581 = vrot.lane.b32.xlu1 %v1753_v15, %s1465_s29  ;;  %p1378_p6 = scmp.ne.s32.totalorder %s1819_s26, %s1377_s27 }
 0x185   : > { %579 = vrot.lane.b32.xlu0 %v355_v17, %s1466_s6  ;;  %p1379_p7 = pnand %p1378_p6, %p1885_p5 }
 0x187   : > { %691 = vrot.lane.b32.xlu1 %v1753_v15, %s1467_s7  ;;  %s1817_s7 = scalar_lea.hbm %s1867_s5, %s1025_s25  ;;  %p1380_p9 = pneg %p1379_p7 }
 0x189   : > { %689 = vrot.lane.b32.xlu0 %v355_v17, %s1468_s8  ;;  %s1476_s8 = smov [#allocation11]  }
 0x1ef   : > { %v359_v18 = vpop.permute.xlu0 %358 }
 0x1f0   : > { %v365_v19 = vsel %vm360_vm2, %v359_v18, 0 }
 0x1f1   : > { %1059 = vmatpush3.bf16.xpose.msra.mxu1 %v365_v19  ;;  %v470_v21 = vpop.permute.xlu1 %469 }
 0x1f2   : > { %1070 = vmatprep.subr.bf16.mxu1 %v1460_v0 }
 0x1f3   : > { %v472_v20 = vpop.permute.xlu0 %471 }
 0x1f4   : > { %v477_v22 = vsel %vm360_vm2, %v472_v20, 0 }
 0x1f5   : > { %v582_v23 = vpop.permute.xlu1 %581 }
 0x1f6   : > { %v587_v24 = vsel %vm360_vm2, %v582_v23, 0 }
 0x1f7   : > { %v580_v26 = vpop.permute.xlu0 %579 }
 0x1f8   : > { %1061 = vmatmul.mubr.msk.bf16.vlgmr.msra.gmra.mrb[0].mxu1 %vm360_vm2, %v355_v17 }
 0x1f9   : > { %1071 = vmatpush3.bf16.xpose.msra.mxu1 %v477_v22  ;;  %1072 = vmatprep.mubr.msk.bf16.mxu1 %vm1461_vm0, %v1460_v0  ;;  %v692_v25 = vpop.permute.xlu1 %691 }
 0x1fa   : > { %1082 = vmatprep.subr.bf16.mxu1 %v1460_v0  ;;  %v697_v27 = vsel %vm360_vm2, %v692_v25, 0 }
 0x1fb   : > { %v690_v28 = vpop.permute.xlu0 %689 }
 0x200   : > { %1073 = vmatmul.mubr.msk.bf16.vlgmr.msra.gmra.mrb[4].mxu1 %vm360_vm2, %v470_v21 }
 0x201   : > { %1083 = vmatpush3.bf16.xpose.msra.mxu1 %v587_v24  ;;  %1084 = vmatprep.mubr.msk.bf16.mxu1 %vm1461_vm0, %v1460_v0 }
 0x202   : > { %1094 = vmatprep.subr.bf16.mxu1 %v1460_v0 }
 0x208   : > { %1085 = vmatmul.mubr.msk.bf16.vlgmr.msra.gmra.mrb[8].mxu1 %vm360_vm2, %v580_v26 }
 0x209   : > { %1095 = vmatpush3.bf16.xpose.msra.mxu1 %v697_v27  ;;  %1096 = vmatprep.mubr.msk.bf16.mxu1 %vm1461_vm0, %v1460_v0 }
 0x20a   : > { %1106 = vmatprep.subr.bf16.mxu1 %v1460_v0 }
 0x210   : > { %1097 = vmatmul.mubr.msk.bf16.vlgmr.msra.gmra.mrb[12].mxu1 %vm360_vm2, %v690_v28 }
 0x211   : > { %1110 = vmatprep.mubr.msk.bf16.mxu1 %vm1461_vm0, %v1460_v0 }
 0x2cb   : > { %v401_v29 = vpop.f32.mrb[0].mxu1 }
 0x2cc   : > { %v1062_v30 = vpop.f32.mrb[1].mxu1  ;;  %v407_v31 = vsel %vm360_vm2, %v401_v29, -inf }
 0x2cd   : > { %408 = vmax.xlane.f32.xlu1 %v407_v31  ;;  %v404_v32 = vpop.f32.mrb[2].mxu1 }
 0x2ce   : > { %v1063_v33 = vpop.f32.mrb[3].mxu1 }
 0x2d3   : > { %v513_v34 = vpop.f32.mrb[4].mxu1 }
 0x2d4   : > { %v1074_v35 = vpop.f32.mrb[5].mxu1  ;;  %v519_v36 = vsel %vm360_vm2, %v513_v34, -inf }
 0x2d5   : > { %520 = vmax.xlane.f32.xlu0 %v519_v36  ;;  %v516_v37 = vpop.f32.mrb[6].mxu1 }
 0x2d6   : > { %v1075_v38 = vpop.f32.mrb[7].mxu1 }
 0x2d7   : > { %v816_v38 = vld [vmem:[#allocation8] sm:$0xff] }
 0x2db   : > { %v623_v39 = vpop.f32.mrb[8].mxu1 }
 0x2dc   : > { %v1086_v40 = vpop.f32.mrb[9].mxu1  ;;  %v629_v41 = vsel %vm360_vm2, %v623_v39, -inf }
 0x2dd   : > { %630 = vmax.xlane.f32.xlu0 %v629_v41  ;;  %v626_v42 = vpop.f32.mrb[10].mxu1  ;;  %v818_v41 = vld [vmem:[#allocation8 + $0x10] sm:$0xff] }
 0x2de   : > { %v1087_v43 = vpop.f32.mrb[11].mxu1  ;;  %v819_v42 = vld [vmem:[#allocation8 + $0x18] sm:$0xff] }
 0x2df   : > { %v821_v43 = vpack.c.bf16 %v819_v42, %v818_v41 }
 0x2e3   : > { %v733_v44 = vpop.f32.mrb[12].mxu1 }
 0x2e4   : > { %v1098_v45 = vpop.f32.mrb[13].mxu1  ;;  %v739_v46 = vsel %vm360_vm2, %v733_v44, -inf }
 0x2e5   : > { %740 = vmax.xlane.f32.xlu1 %v739_v46  ;;  %v736_v47 = vpop.f32.mrb[14].mxu1 }
 0x2e6   : > { %v1099_v48 = vpop.f32.mrb[15].mxu1 }
 0x35a   : > { %v409_v49 = vpop.xlane.xlu1 %408 }
 0x35b   : > { %v410_v50 = vsub.f32 %v401_v29, %v409_v49 }
 0x35d   : > { %v411_v51 = vmul.f32 1.442695, %v410_v50 }
 0x35f   : > { %1219 = vpow2.f32 %v411_v51 }
 0x362   : > { %v521_v52 = vpop.xlane.xlu0 %520 }
 0x363   : > { %v522_v53 = vsub.f32 %v513_v34, %v521_v52 }
 0x365   : > { %v523_v54 = vmul.f32 1.442695, %v522_v53 }
 0x367   : > { %1221 = vpow2.f32 %v523_v54 }
 0x369   : > { %v1220_v55 = vpop.eup %1219 }
 0x36a   : > { %v631_v56 = vpop.xlane.xlu0 %630  ;;  %v413_v57 = vsel %vm360_vm2, %v1220_v55, 0.0 }
 0x36b   : > { %v632_v58 = vsub.f32 %v623_v39, %v631_v56  ;;  %414 = vadd.xlane.f32.xlu0 %v413_v57  ;;  %v817_v39 = vld [vmem:[#allocation8 + $0x8] sm:$0xff] }
 0x36c   : > { %v820_v40 = vpack.c.bf16 %v817_v39, %v816_v38 }
 0x36d   : > { %v633_v59 = vmul.f32 1.442695, %v632_v58  ;;  %v1022_v58 = vld [vmem:[#allocation10] ss:$0 sm:$0xff] }
 0x36e   : > { %1107 = vmatpush3.bf16.msra.mxu1 %v820_v40 }
 0x36f   : > { %1223 = vpow2.f32 %v633_v59  ;;  %1108 = vmatprep.subr.bf16.mxu1 %v1460_v0 }
 0x371   : > { %v1222_v60 = vpop.eup %1221 }
 0x372   : > { %v525_v61 = vsel %vm360_vm2, %v1222_v60, 0.0  ;;  %v741_v1 = vpop.xlane.xlu1 %740  ;;  %1109 = vmatpush3.bf16.msra.mxu1 %v821_v43 }
 0x373   : > { %526 = vadd.xlane.f32.xlu1 %v525_v61  ;;  %v742_v2 = vsub.f32 %v733_v44, %v741_v1 }
 0x375   : > { %v743_v3 = vmul.f32 1.442695, %v742_v2 }
 0x377   : > { %1225 = vpow2.f32 %v743_v3 }
 0x379   : > { %v1224_v62 = vpop.eup %1223 }
 0x37a   : > { %v635_v63 = vsel %vm360_vm2, %v1224_v62, 0.0 }
 0x37b   : > { %636 = vadd.xlane.f32.xlu0 %v635_v63 }
 0x381   : > { %v1226_v4 = vpop.eup %1225 }
 0x382   : > { %v745_v5 = vsel %vm360_vm2, %v1226_v4, 0.0 }
 0x384   : > { %531 = vrot.lane.b32.xlu1 %v1753_v15, %s1469_s14  ;;  %s1381_s14 = sshll.u32 %s1476_s8, 4  ;;  %s1382_s14 = int_to_ptr.vmem [resolvable:$false] %s1381_s14 }
 0x385   : > { %p1384_p12 = scmp.lt.s32.totalorder %s1819_s26, %s1382_s14 }
 0x391   : > { %419 = vrot.lane.b32.xlu0 %v1753_v15, %s1470_s10  ;;  %s1383_s10 = scalar_lea.vmem %s1382_s14, 256 }
 0x392   : > { %p1385_p3 = scmp.lt.s32.totalorder %s1383_s10, %s1377_s27 }
 0x394   : > { %p1386_p13 = por %p1385_p3, %p1384_p12 }
 0x395   : > { %751 = vrot.lane.b32.xlu0 %v1753_v15, %s1471_s17 }
 0x396   : > { %p1387_p0 = pnand %p1386_p13, %p1380_p9 }
 0x3a8   : > { %746 = vadd.xlane.f32.xlu1 %v745_v5 }
 0x3b9   : > { %641 = vrot.lane.b32.xlu1 %v1753_v15, %s1472_s22 }
 0x3f8   : > { %v415_v6 = vpop.xlane.xlu0 %414 }
 0x3f9   : > { %1227 = vrcp.f32 %v415_v6 }
 0x400   : > { %v527_v7 = vpop.xlane.xlu1 %526 }
 0x401   : > { %1229 = vrcp.f32 %v527_v7 }
 0x403   : > { %v1228_v8 = vpop.eup %1227 }
 0x404   : > { %v417_v10 = vmul.f32 %v1228_v8, %v1220_v55  ;;  %v532_v13 = vpop.permute.xlu1 %531 }
 0x405   : > { %v537_v17 = vsel %vm424_vm3, %v532_v13, 0 }
 0x406   : > { %v418_v14 = vpack.c.bf16 %v417_v10, %v417_v10 }
 0x408   : > { %v637_v9 = vpop.xlane.xlu0 %636 }
 0x409   : > { %1231 = vrcp.f32 %v637_v9 }
 0x40b   : > { %v1230_v16 = vpop.eup %1229 }
 0x40c   : > { %v420_v11 = vpop.permute.xlu0 %419  ;;  %v529_v15 = vmul.f32 %v1230_v16, %v1222_v60 }
 0x40d   : > { %v426_v12 = vsel %vm424_vm3, %v420_v11, 0 }
 0x40e   : > { %1065 = vmatpush3.bf16.msra.mxu0 %v426_v12  ;;  %v530_v18 = vpack.c.bf16 %v529_v15, %v529_v15 }
 0x40f   : > { %1076 = vmatprep.subr.bf16.mxu0 %v1460_v0 }
 0x410   : > { %v752_v24 = vpop.permute.xlu0 %751 }
 0x411   : > { %1067 = vmatmul.mubr.msk.bf16.vlgmr.msra.gmra.mrb[4].mxu0 %vm360_vm2, %v418_v14  ;;  %v757_v26 = vsel %vm424_vm3, %v752_v24, 0 }
 0x412   : > { %1077 = vmatpush3.bf16.msra.mxu0 %v537_v17  ;;  %1078 = vmatprep.mubr.msk.bf16.mxu0 %vm1461_vm0, %v1460_v0 }
 0x413   : > { %1088 = vmatprep.subr.bf16.mxu0 %v1460_v0  ;;  %v1232_v19 = vpop.eup %1231 }
 0x414   : > { %v639_v21 = vmul.f32 %v1232_v19, %v1224_v62 }
 0x416   : > { %v640_v25 = vpack.c.bf16 %v639_v21, %v639_v21 }
 0x419   : > { %1079 = vmatmul.mubr.msk.bf16.vlgmr.msra.gmra.mrb[8].mxu0 %vm360_vm2, %v530_v18 }
 0x41a   : > { %1090 = vmatprep.mubr.msk.bf16.mxu0 %vm1461_vm0, %v1460_v0 }
 0x435   : > { %v747_v20 = vpop.xlane.xlu1 %746 }
 0x436   : > { %1233 = vrcp.f32 %v747_v20 }
 0x439   : > { %v642_v22 = vpop.permute.xlu1 %641 }
 0x43a   : > { %v647_v23 = vsel %vm424_vm3, %v642_v22, 0 }
 0x43b   : > { %1089 = vmatpush3.bf16.msra.mxu0 %v647_v23 }
 0x43c   : > { %1100 = vmatprep.subr.bf16.mxu0 %v1460_v0 }
 0x43e   : > { %1091 = vmatmul.mubr.msk.bf16.vlgmr.msra.gmra.mrb[12].mxu0 %vm360_vm2, %v640_v25 }
 0x43f   : > { %1101 = vmatpush3.bf16.msra.mxu0 %v757_v26  ;;  %1102 = vmatprep.mubr.msk.bf16.mxu0 %vm1461_vm0, %v1460_v0 }
 0x440   : > { %v1234_v27 = vpop.eup %1233 }
 0x441   : > { %v749_v28 = vmul.f32 %v1234_v27, %v1226_v4 }
 0x443   : > { %v750_v29 = vpack.c.bf16 %v749_v28, %v749_v28 }
 0x446   : > { %1103 = vmatmul.mubr.msk.bf16.vlgmr.msra.gmra.mrb[16].mxu0 %vm360_vm2, %v750_v29 }
 0x4e4   : > { %v462_v30 = vpop.f32.mrb[4].mxu0 }
 0x4e5   : > { %v1068_v31 = vpop.f32.mrb[5].mxu0 }
 0x4e6   : > { %v465_v32 = vpop.f32.mrb[6].mxu0 }
 0x4e7   : > { %v1069_v33 = vpop.f32.mrb[7].mxu0 }
 0x4ec   : > { %v573_v34 = vpop.f32.mrb[8].mxu0 }
 0x4ed   : > { %800 = vrot.lane.b32.xlu1 %v573_v34, %s1473_s30  ;;  %v1080_v35 = vpop.f32.mrb[9].mxu0 }
 0x4ee   : > { %v576_v36 = vpop.f32.mrb[10].mxu0 }
 0x4ef   : > { %v1081_v37 = vpop.f32.mrb[11].mxu0 }
 0x511   : > { %v683_v44 = vpop.f32.mrb[12].mxu0 }
 0x512   : > { %804 = vrot.lane.b32.xlu0 %v683_v44, %s1474_s15  ;;  %v1092_v45 = vpop.f32.mrb[13].mxu0 }
 0x513   : > { %v686_v46 = vpop.f32.mrb[14].mxu0 }
 0x514   : > { %v1093_v47 = vpop.f32.mrb[15].mxu0 }
 0x519   : > { %v793_v48 = vpop.f32.mrb[16].mxu0 }
 0x51a   : > { %808 = vrot.lane.b32.xlu1 %v793_v48, %s1475_s13  ;;  %v1104_v49 = vpop.f32.mrb[17].mxu0 }
 0x51b   : > { %v796_v50 = vpop.f32.mrb[18].mxu0 }
 0x51c   : > { %v1105_v51 = vpop.f32.mrb[19].mxu0 }
 0x55f   : > { %v801_v52 = vpop.permute.xlu1 %800 }
 0x560   : > { %v811_v53 = vsel %vm360_vm2, %v462_v30, %v801_v52 }
 0x584   : > { %v805_v0 = vpop.permute.xlu0 %804 }
 0x585   : > { %v813_v54 = vsel %vm812_vm4, %v811_v53, %v805_v0 }
 0x58c   : > { %v809_v55 = vpop.permute.xlu1 %808 }
 0x58d   : > { %v815_v56 = vsel %vm814_vm5, %v813_v54, %v809_v55 }
 0x58e   : > { %v823_v57 = vpack.c.bf16 %v815_v56, %v815_v56 }
 0x590   : > { %1111 = vmatmul.mubr.msk.bf16.vlgmr.msra.gmra.mrb[16].mxu1 %vm310_vm1, %v823_v57 }
 0x663   : > { %v867_v59 = vpop.f32.mrb[16].mxu1 }
 0x664   : > { %v868_v60 = vadd.f32 %v1022_v58, %v867_v59  ;;  %v1112_v61 = vpop.f32.mrb[17].mxu1 }
 0x665   : > { %v870_v62 = vpop.f32.mrb[18].mxu1 }
 0x666   : > { %v1113_v63 = vpop.f32.mrb[19].mxu1  ;;  %873 = vst.msk [vmem:[%s293_s9] sm:$0xff] %vm310_vm1, %v868_v60 }
 0x667   : > { %1390 = shalt.err (!%p1387_p0)
}
 0x668   : > { %s1391_s11 = scalar_lea.hbm %s1817_s7, 128  ;;  %s1395_s30 = scalar_lea.hbm %s1867_s5, 256 }
 0x669   : > { %p1392_p2 = scmp.ne.s32.totalorder %s1817_s7, %s1391_s11  ;;  %p1396_p10 = scmp.lt.u32.totalorder %s1817_s7, %s1867_s5 }
 0x66a   : > { %p1397_p11 = scmp.lt.u32.totalorder %s1395_s30, %s1391_s11  ;;  %p1399_p6 = scmp.lt.u32.totalorder %s1391_s11, %s1817_s7 }
 0x66b   : > { %p1393_p8 = pnand %p1392_p2, %p1885_p5 }
 0x66c   : > { %p1398_p1 = por %p1397_p11, %p1396_p10 }
 0x66d   : > { %p1394_p4 = pneg %p1393_p8 }
 0x66e   : > { %p1400_p7 = por %p1399_p6, %p1398_p1 }
 0x670   : > { %p1401_p9 = pnand %p1400_p7, %p1394_p4 }
 0x672   : > { %1404 = shalt.err (!%p1401_p9)
}
 0x673   : > { %1132 = dma.vmem_to_hbm [thread:$0]  (%p1885_p5), %s1819_s26, 128, %s1817_s7, %s875_s24  }
 0x674 PF: > { %s900_s25 = sand.u32 1, %s1439_s18   ;;  %p1886_p12 = scmp.ne.s32.totalorder %s1878_s12, 0 }
 0x675   : > { %p1887_p3 = scmp.ge.s32.totalorder %s1451_s21, 2  ;;  %s901_s9 = scalar_lea.sflag [#allocation4], %s900_s25 }
 0x677   : > { %p1152_p13 = pnand %p1887_p3, %p1886_p12 }
 0x679   : > { %1434 = dma.done.wait (!%p1152_p13), %s901_s9, 128  }
 0x67a   : > { %1436 = vsyncadd (!%p1152_p13), %s901_s9, 4294967168  ;;  %p20_p0 = scmp.ge.s32.totalorder %s1648_s28, 4   ;;  %s1888_s18 = smov %s1443_s19 }
 0x67b   : > { %s1889_s19 = smov %s1447_s20  ;;  %s1890_s20 = smov %s1659_s16 }
 0x67c   : > { %s1891_s21 = smov %s1648_s28  ;;  %22 = sbr.rel (!%p20_p0) target bundleno = 7 (0x7), region = 101 }
 0x683   :  { %906 = vsyncpa [#allocation3], 1 }
 0x684   :  { %908 = vsyncpa [#allocation3 + $0x1], 1 }
 0x685   :  { %909 = vsyncpa [#allocation6], 1 }
 0x686   :  { %910 = vsyncpa [#allocation9], 1 }
 0x687   :  { %911 = vsyncpa [#allocation4], 1 }
 0x688   :  { %913 = vsyncpa [#allocation4 + $0x1], 1 }

</bundles_post_ra>
